<compile_context>
chip_gen: v7x
topology: tpu7x:2x2x1
jax: 0.10.0
libtpu: 0.0.40
codegen_flags: <defaults>
</compile_context>

<pallas_src>
import jax
import jax.numpy as jnp
from jax.experimental import pallas as pl
from jax.experimental.pallas import tpu as pltpu

EPS = 1e-7
THRESHOLD = 0.5            # used only by the reference; kernel uses the sign test
LANES = 128
ACC_ROWS = 8               # sublane-aligned vector-accumulator height
MAX_ROW_TILE = 1024        # (1024,128) f32 tile = 512 KiB per input per buffer
NUM_SPLITS = 2             # leading "parallel" axis; v7x megacore splits it across TCs


def _iou_kernel(pr_ref, gt_ref, acc_ref):
    """One grid step: accumulate [intersection, sum_gt, sum_pr] vector partials.

    pr_ref, gt_ref : VMEM (ROW_TILE, LANES) tiles, native input dtype
    acc_ref        : VMEM (1, 3, ACC_ROWS, LANES) f32 running partials
                     (kernel output, resident across the reduction axis)
    """
    i = pl.program_id(1)

    @pl.when(i == 0)
    def _init():
        acc_ref[...] = jnp.zeros_like(acc_ref)

    pr = pr_ref[...]
    # sigmoid(x) > 0.5  <=>  x > 0  (sigmoid is monotone, sigmoid(0) = 0.5, strict '>')
    mask = pr > 0
    prf = mask.astype(jnp.float32)
    gt = gt_ref[...].astype(jnp.float32)
    inter = jnp.where(mask, gt, 0.0)

    def fold(x):
        # (ROW_TILE, LANES) -> (ACC_ROWS, LANES): tile-aligned reshape + VPU adds only.
        return jnp.sum(x.reshape(-1, ACC_ROWS, LANES), axis=0)

    acc_ref[0, 0, :, :] += fold(inter)
    acc_ref[0, 1, :, :] += fold(gt)
    acc_ref[0, 2, :, :] += fold(prf)


def _round_up(x, m):
    return ((x + m - 1) // m) * m


def iou_metric(y_pr, y_gt, eps=EPS):
    """IoU metric, matching segmentation_models_pytorch IoUMetric.forward."""
    assert y_pr.shape == y_gt.shape
    total = 1
    for d in y_pr.shape:
        total *= d

    rows_needed = pl.cdiv(total, LANES)
    row_tile = min(MAX_ROW_TILE, _round_up(rows_needed, ACC_ROWS))
    rows = _round_up(rows_needed, NUM_SPLITS * row_tile)
    steps_per_split = rows // (NUM_SPLITS * row_tile)
    pad = rows * LANES - total

    pr_flat = y_pr.reshape(-1)
    gt_flat = y_gt.reshape(-1)
    if pad:
        # pr padding is a negative logit (thresholds to 0); gt padding contributes 0.
        pr_flat = jnp.concatenate(
            [pr_flat, jnp.full((pad,), -1, dtype=pr_flat.dtype)])
        gt_flat = jnp.concatenate(
            [gt_flat, jnp.zeros((pad,), dtype=gt_flat.dtype)])

    pr2d = pr_flat.reshape(rows, LANES)
    gt2d = gt_flat.reshape(rows, LANES)

    def in_map(s, i):
        return (s * steps_per_split + i, 0)

    partials = pl.pallas_call(
        _iou_kernel,
        out_shape=jax.ShapeDtypeStruct(
            (NUM_SPLITS, 3, ACC_ROWS, LANES), jnp.float32),
        grid_spec=pltpu.PrefetchScalarGridSpec(
            num_scalar_prefetch=0,
            grid=(NUM_SPLITS, steps_per_split),
            in_specs=[
                pl.BlockSpec((row_tile, LANES), in_map),
                pl.BlockSpec((row_tile, LANES), in_map),
            ],
            out_specs=pl.BlockSpec(
                (1, 3, ACC_ROWS, LANES), lambda s, i: (s, 0, 0, 0)),
        ),
        compiler_params=pltpu.CompilerParams(
            dimension_semantics=("parallel", "arbitrary"),
        ),
    )(pr2d, gt2d)

    intersection = jnp.sum(partials[:, 0])
    sum_gt = jnp.sum(partials[:, 1])
    sum_pr = jnp.sum(partials[:, 2])
    union = sum_gt + sum_pr - intersection + eps
    return (intersection + eps) / union


def iou_reference(y_pr, y_gt, eps=EPS, threshold=THRESHOLD):
    pr = jax.nn.sigmoid(y_pr.astype(jnp.float32))
    pr = (pr > threshold).astype(jnp.float32)
    gt = y_gt.astype(jnp.float32)
    intersection = jnp.sum(gt * pr)
    union = jnp.sum(gt) + jnp.sum(pr) - intersection + eps
    return (intersection + eps) / union


if __name__ == "__main__":
    key = jax.random.PRNGKey(0)
    k1, k2 = jax.random.split(key)

    # NCHW, like the PyTorch module's inputs: logits + binary ground truth.
    y_pr = jax.random.normal(k1, (2, 4, 16, 16), dtype=jnp.float32)
    y_gt = (jax.random.uniform(k2, (2, 4, 16, 16)) > 0.5).astype(jnp.float32)

    result = jax.block_until_ready(iou_metric(y_pr, y_gt))

    ref = iou_reference(y_pr, y_gt)
    assert jnp.allclose(result, ref, atol=1e-6, rtol=1e-6), (result, ref)

    print("KERNEL_OK")
</pallas_src>

<mosaic_0001>
module attributes {stable_mosaic.version = 11 : i64} {
  func.func @_iou_kernel(%arg0: i32, %arg1: i32, %arg2: memref<16x128xf32, #tpu.memory_space<vmem>>, %arg3: memref<16x128xf32, #tpu.memory_space<vmem>>, %arg4: memref<1x3x8x128xf32, #tpu.memory_space<vmem>>) attributes {dimension_semantics = [#tpu.dimension_semantics<parallel>, #tpu.dimension_semantics<arbitrary>], iteration_bounds = array<i64: 2, 1>, scalar_prefetch = 0 : i64, scratch_operands = 0 : i64, tpu.core_type = #tpu.core_type<tc>, window_params = [{transform_indices = @transform_0, window_bounds = array<i64: 16, 128>}, {transform_indices = @transform_1, window_bounds = array<i64: 16, 128>}, {transform_indices = @transform_2, window_bounds = array<i64: 1, 3, 8, 128>}]} {
    %c0_i32 = arith.constant 0 : i32
    %0 = arith.cmpi eq, %arg1, %c0_i32 : i32
    %1 = arith.extui %0 : i1 to i32
    %c0_i32_0 = arith.constant 0 : i32
    %2 = arith.cmpi ne, %1, %c0_i32_0 : i32
    scf.if %2 {
      %cst_30 = arith.constant 0.000000e+00 : f32
      %35 = vector.broadcast %cst_30 : f32 to vector<1x3x8x128xf32>
      %c0_31 = arith.constant 0 : index
      %c0_32 = arith.constant 0 : index
      %c0_33 = arith.constant 0 : index
      %c0_34 = arith.constant 0 : index
      %36 = vector.load %arg4[%c0_31, %c0_32, %c0_33, %c0_34] : memref<1x3x8x128xf32, #tpu.memory_space<vmem>>, vector<1x3x8x128xf32>
      tpu.vector_store %arg4[%c0_31, %c0_32, %c0_33, %c0_34], %35 {strides = array<i32>} : memref<1x3x8x128xf32, #tpu.memory_space<vmem>>, vector<1x3x8x128xf32>,
    } else {
    }
    %c0 = arith.constant 0 : index
    %c0_1 = arith.constant 0 : index
    %3 = vector.load %arg2[%c0, %c0_1] : memref<16x128xf32, #tpu.memory_space<vmem>>, vector<16x128xf32>
    %cst = arith.constant 0.000000e+00 : f32
    %4 = vector.broadcast %cst : f32 to vector<16x128xf32>
    %5 = arith.cmpf ogt, %3, %4 : vector<16x128xf32>
    %6 = arith.extui %5 : vector<16x128xi1> to vector<16x128xi32>
    %7 = arith.sitofp %6 : vector<16x128xi32> to vector<16x128xf32>
    %c0_2 = arith.constant 0 : index
    %c0_3 = arith.constant 0 : index
    %8 = vector.load %arg3[%c0_2, %c0_3] : memref<16x128xf32, #tpu.memory_space<vmem>>, vector<16x128xf32>
    %cst_4 = arith.constant 0.000000e+00 : f32
    %9 = vector.broadcast %cst_4 : f32 to vector<16x128xf32>
    %10 = arith.select %5, %8, %9 : vector<16x128xi1>, vector<16x128xf32>
    %c0_5 = arith.constant 0 : index
    %c0_6 = arith.constant 0 : index
    %c0_7 = arith.constant 0 : index
    %c0_8 = arith.constant 0 : index
    %11 = vector.load %arg4[%c0_5, %c0_6, %c0_7, %c0_8] : memref<1x3x8x128xf32, #tpu.memory_space<vmem>>, vector<1x1x8x128xf32>
    %12 = vector.shape_cast %11 : vector<1x1x8x128xf32> to vector<8x128xf32>
    %13 = vector.shape_cast %10 : vector<16x128xf32> to vector<2x8x128xf32>
    %cst_9 = arith.constant dense<0.000000e+00> : vector<8x128xf32>
    %14 = vector.multi_reduction <add>, %13, %cst_9 [0] : vector<2x8x128xf32> to vector<8x128xf32>
    %15 = arith.addf %12, %14 : vector<8x128xf32>
    %c0_10 = arith.constant 0 : index
    %c0_11 = arith.constant 0 : index
    %c0_12 = arith.constant 0 : index
    %c0_13 = arith.constant 0 : index
    %16 = vector.load %arg4[%c0_10, %c0_11, %c0_12, %c0_13] : memref<1x3x8x128xf32, #tpu.memory_space<vmem>>, vector<1x1x8x128xf32>
    %17 = vector.shape_cast %16 : vector<1x1x8x128xf32> to vector<8x128xf32>
    %18 = vector.shape_cast %15 : vector<8x128xf32> to vector<1x1x8x128xf32>
    tpu.vector_store %arg4[%c0_10, %c0_11, %c0_12, %c0_13], %18 {strides = array<i32>} : memref<1x3x8x128xf32, #tpu.memory_space<vmem>>, vector<1x1x8x128xf32>,
    %c0_14 = arith.constant 0 : index
    %c1 = arith.constant 1 : index
    %c0_15 = arith.constant 0 : index
    %c0_16 = arith.constant 0 : index
    %19 = vector.load %arg4[%c0_14, %c1, %c0_15, %c0_16] : memref<1x3x8x128xf32, #tpu.memory_space<vmem>>, vector<1x1x8x128xf32>
    %20 = vector.shape_cast %19 : vector<1x1x8x128xf32> to vector<8x128xf32>
    %21 = vector.shape_cast %8 : vector<16x128xf32> to vector<2x8x128xf32>
    %cst_17 = arith.constant dense<0.000000e+00> : vector<8x128xf32>
    %22 = vector.multi_reduction <add>, %21, %cst_17 [0] : vector<2x8x128xf32> to vector<8x128xf32>
    %23 = arith.addf %20, %22 : vector<8x128xf32>
    %c0_18 = arith.constant 0 : index
    %c1_19 = arith.constant 1 : index
    %c0_20 = arith.constant 0 : index
    %c0_21 = arith.constant 0 : index
    %24 = vector.load %arg4[%c0_18, %c1_19, %c0_20, %c0_21] : memref<1x3x8x128xf32, #tpu.memory_space<vmem>>, vector<1x1x8x128xf32>
    %25 = vector.shape_cast %24 : vector<1x1x8x128xf32> to vector<8x128xf32>
    %26 = vector.shape_cast %23 : vector<8x128xf32> to vector<1x1x8x128xf32>
    tpu.vector_store %arg4[%c0_18, %c1_19, %c0_20, %c0_21], %26 {strides = array<i32>} : memref<1x3x8x128xf32, #tpu.memory_space<vmem>>, vector<1x1x8x128xf32>,
    %c0_22 = arith.constant 0 : index
    %c2 = arith.constant 2 : index
    %c0_23 = arith.constant 0 : index
    %c0_24 = arith.constant 0 : index
    %27 = vector.load %arg4[%c0_22, %c2, %c0_23, %c0_24] : memref<1x3x8x128xf32, #tpu.memory_space<vmem>>, vector<1x1x8x128xf32>
    %28 = vector.shape_cast %27 : vector<1x1x8x128xf32> to vector<8x128xf32>
    %29 = vector.shape_cast %7 : vector<16x128xf32> to vector<2x8x128xf32>
    %cst_25 = arith.constant dense<0.000000e+00> : vector<8x128xf32>
    %30 = vector.multi_reduction <add>, %29, %cst_25 [0] : vector<2x8x128xf32> to vector<8x128xf32>
    %31 = arith.addf %28, %30 : vector<8x128xf32>
    %c0_26 = arith.constant 0 : index
    %c2_27 = arith.constant 2 : index
    %c0_28 = arith.constant 0 : index
    %c0_29 = arith.constant 0 : index
    %32 = vector.load %arg4[%c0_26, %c2_27, %c0_28, %c0_29] : memref<1x3x8x128xf32, #tpu.memory_space<vmem>>, vector<1x1x8x128xf32>
    %33 = vector.shape_cast %32 : vector<1x1x8x128xf32> to vector<8x128xf32>
    %34 = vector.shape_cast %31 : vector<8x128xf32> to vector<1x1x8x128xf32>
    tpu.vector_store %arg4[%c0_26, %c2_27, %c0_28, %c0_29], %34 {strides = array<i32>} : memref<1x3x8x128xf32, #tpu.memory_space<vmem>>, vector<1x1x8x128xf32>,
    return
  }
  func.func @transform_0(%arg0: i32, %arg1: i32) -> (i32, i32) {
    %c1_i32 = arith.constant 1 : i32
    %0 = arith.muli %arg0, %c1_i32 : i32
    %1 = arith.addi %0, %arg1 : i32
    %c0_i32 = arith.constant 0 : i32
    %c0_i32_0 = arith.constant 0 : i32
    return %1, %c0_i32 : i32, i32
  }
  func.func @transform_1(%arg0: i32, %arg1: i32) -> (i32, i32) {
    %c1_i32 = arith.constant 1 : i32
    %0 = arith.muli %arg0, %c1_i32 : i32
    %1 = arith.addi %0, %arg1 : i32
    %c0_i32 = arith.constant 0 : i32
    %c0_i32_0 = arith.constant 0 : i32
    return %1, %c0_i32 : i32, i32
  }
  func.func @transform_2(%arg0: i32, %arg1: i32) -> (i32, i32, i32, i32) {
    %c0_i32 = arith.constant 0 : i32
    %c0_i32_0 = arith.constant 0 : i32
    %c0_i32_1 = arith.constant 0 : i32
    %c0_i32_2 = arith.constant 0 : i32
    return %arg0, %c0_i32, %c0_i32_0, %c0_i32_1 : i32, i32, i32, i32
  }
}

</mosaic_0001>

<bundles_post_ra>
// kernel: tpu_custom_call.1
= control target key start
LH: loop header
LB: loop body
LE: loop exit
PB: predicated region body
PF: predicated region fallthrough
CT: control target
= control target key end

     0   :  { %7 = vsyncpa [#allocation3], 0  ;;  %s883_s0 = inlined_call_operand.hbm [shape: f32[32,128], index: 0, kind: input, shape index: {}]   ;;  %s884_s1 = inlined_call_operand.hbm [shape: f32[32,128], index: 1, kind: input, shape index: {}]   ;;  %s885_s2 = inlined_call_operand.hbm [shape: f32[2,3,8,128], index: 2, kind: output, shape index: {}]  }
   0x1   :  { %9 = vsyncpa [#allocation3 + $0x1], 0 }
   0x2   :  { %10 = vsyncpa [#allocation6], 0 }
   0x3   :  { %12 = vsyncpa [#allocation6 + $0x1], 0 }
   0x4   :  { %13 = vsyncpa [#allocation4], 0 }
   0x5   :  { %15 = vsyncpa [#allocation4 + $0x1], 0  ;;  %s646_s9 = smov 0   ;;  %s648_s10 = smov 0  }
   0x6   :  { %s650_s11 = smov 0   ;;  %s652_s12 = smov 0  }
   0x7   :  { %s654_s13 = smov 0   ;;  %s656_s14 = smov 0  }
   0x8 LB: > { %s377_s15 = sadd.s32 4294967295, %s621_s14   ;;  %s378_s16 = sadd.s32 4294967294, %s621_s14   ;;  %s621_s14 = sphi %s656_s14, %s21_s14   ;;  %s617_s13 = sphi %s654_s13, %s903_s13   ;;  %s613_s12 = sphi %s652_s12, %s902_s12   ;;  %s609_s11 = sphi %s650_s11, %s901_s11   ;;  %s605_s10 = sphi %s648_s10, %s900_s10   ;;  %s601_s9 = sphi %s646_s9, %s899_s9  }
   0x9   : > { %s33_s17 = sadd.s32 1, %s617_s13  ;;  %s42_s18 = sadd.s32 1, %s609_s11 }
   0xa   : > { %p35_p0 = scmp.ge.s32.totalorder %s33_s17, 2  ;;  %p49_p1 = scmp.ne.s32.totalorder %s609_s11, %s605_s10 }
   0xb   : > { %p50_p2 = scmp.eq.s32.totalorder %s621_s14, 0  ;;  %p55_p3 = scmp.ne.s32.totalorder %s605_s10, %s601_s9 }
   0xc   : > { %s905_s17 = smov (%p35_p0, %s33_s17), 0  ;;  %p56_p5 = scmp.eq.s32.totalorder %s377_s15, 0 }
   0xd   : > { %p687_p4 = por %p50_p2, %p49_p1  ;;  %s39_s20 = ssub.s32 %s617_s13, %s905_s17 }
   0xe   : > { %p107_p6 = scmp.eq.s32.totalorder %s377_s15, 1  ;;  %p40_p7 = scmp.eq.s32.totalorder %s39_s20, 0 }
   0xf   : > { %p693_p8 = por %p56_p5, %p55_p3  ;;  %p113_p10 = scmp.eq.s32.totalorder %s378_s16, 1 }
  0x10   : > { %p697_p9 = por %p107_p6, %p49_p1  ;;  %p420_p13 = scmp.lt.s32.totalorder %s621_s14, 2 }
  0x11   : > { %s889_s21 = scalar_select %p693_p8, 1, 0 }
  0x12   : > { %s890_s22 = scalar_select %p697_p9, 1, 0 }
  0x13   : > { %s702_s23 = scalar_select %p40_p7, %s609_s11, %s42_s18  }
  0x14   : > { %p704_p11 = por %p113_p10, %p55_p3  ;;  %s711_s25 = sand.u32 1, %s609_s11  }
  0x15   : > { %s381_s26 = sshll.u32 %s711_s25, 4  ;;  %s399_s27 = sshll.u32 %s617_s13, 8 }
  0x16   : > { %s891_s24 = scalar_select %p704_p11, 1, 0 }
  0x17   : > { %s720_s30 = scalar_lea.hbm %s883_s0, %s399_s27  ;;  %s137_s3 = scalar_lea.vmem [#allocation2], %s381_s26 }
  0x18   : > { %s145_s4 = sshll.u32 %s137_s3, 4  ;;  %p728_p0 = pnand %p420_p13, %p687_p4  ;;  %s724_s4 = int_to_ptr.vmem [resolvable:$true] %s145_s4 }
  0x19   : > { %s134_s6 = scalar_lea.sflag [#allocation3], %s711_s25  ;;  %s475_s7 = scalar_lea.hbm %s720_s30, 256 }
  0x1a   : > { %p476_p2 = scmp.ne.s32.totalorder %s720_s30, %s475_s7  ;;  %p477_p3 = pneg %p728_p0 }
  0x1b   : > { %s480_s16 = scalar_lea.hbm %s883_s0, 512  ;;  %p481_p4 = scmp.lt.u32.totalorder %s720_s30, %s883_s0 }
  0x1c   : > { %p478_p5 = pnand %p477_p3, %p476_p2  ;;  %p482_p7 = scmp.lt.u32.totalorder %s480_s16, %s475_s7 }
  0x1d   : > { %p484_p13 = scmp.lt.u32.totalorder %s475_s7, %s720_s30 }
  0x1e   : > { %p479_p6 = pneg %p478_p5  ;;  %p483_p10 = por %p482_p7, %p481_p4 }
  0x20   : > { %p485_p12 = por %p484_p13, %p483_p10 }
  0x22   : > { %p486_p1 = pnand %p485_p12, %p479_p6 }
  0x24   : > { %489 = shalt.err (!%p486_p1)
}
  0x25   : > { %s490_s20 = scalar_lea.vmem %s724_s4, 256  ;;  %s623_s28 = smov [#allocation2]  }
  0x26   : > { %p491_p2 = scmp.ne.s32.totalorder %s724_s4, %s490_s20  ;;  %s495_s29 = sshll.u32 %s623_s28, 4  ;;  %s496_s29 = int_to_ptr.vmem [resolvable:$false] %s495_s29 }
  0x27   : > { %s497_s3 = scalar_lea.vmem %s496_s29, 512  ;;  %p498_p9 = scmp.lt.s32.totalorder %s724_s4, %s496_s29 }
  0x28   : > { %p493_p5 = pnand %p491_p2, %p477_p3  ;;  %p499_p4 = scmp.lt.s32.totalorder %s497_s3, %s490_s20 }
  0x2a   : > { %p494_p11 = pneg %p493_p5  ;;  %p500_p7 = por %p499_p4, %p498_p9 }
  0x2c   : > { %p501_p10 = pnand %p500_p7, %p494_p11 }
  0x2e   : > { %504 = shalt.err (!%p501_p10)
}
  0x2f   : > { %s624_s7 = smov 128   ;;  %s625_s8 = smov 8  }
  0x30   : > { %412 = dma.hbm_to_vmem [thread:$0]  (!%p728_p0), %s720_s30, 256, %s724_s4, %s134_s6, %s624_s7, %s624_s7, %s625_s8  }
  0x31   : > { %p175_p9 = scmp.lt.s32.totalorder %s621_s14, 3  ;;  %s770_s18 = scalar_lea.hbm %s884_s1, %s399_s27 }
  0x32   : > { %p893_p11 = scmp.ge.s32.totalorder %s621_s14, 1  ;;  %s159_s20 = scalar_lea.vmem [#allocation5], %s381_s26 }
  0x33   : > { %s167_s28 = sshll.u32 %s159_s20, 4  ;;  %s156_s30 = scalar_lea.sflag [#allocation6], %s711_s25  ;;  %s780_s28 = int_to_ptr.vmem [resolvable:$true] %s167_s28 }
  0x34   : > { %p774_p12 = pnand %p893_p11, %p175_p9  ;;  %s505_s4 = scalar_lea.hbm %s770_s18, 256 }
  0x35   : > { %p506_p1 = scmp.ne.s32.totalorder %s770_s18, %s505_s4  ;;  %s510_s29 = scalar_lea.hbm %s884_s1, 512 }
  0x36   : > { %p511_p2 = scmp.lt.u32.totalorder %s770_s18, %s884_s1  ;;  %p512_p5 = scmp.lt.u32.totalorder %s510_s29, %s505_s4 }
  0x37   : > { %p508_p6 = pnand %p506_p1, %p477_p3  ;;  %p514_p7 = scmp.lt.u32.totalorder %s505_s4, %s770_s18 }
  0x38   : > { %p513_p4 = por %p512_p5, %p511_p2 }
  0x39   : > { %p509_p13 = pneg %p508_p6 }
  0x3a   : > { %p515_p10 = por %p514_p7, %p513_p4 }
  0x3c   : > { %p516_p9 = pnand %p515_p10, %p509_p13 }
  0x3e   : > { %519 = shalt.err (!%p516_p9)
}
  0x3f   : > { %s520_s26 = scalar_lea.vmem %s780_s28, 256  ;;  %s626_s16 = smov [#allocation5]  }
  0x40   : > { %p521_p11 = scmp.ne.s32.totalorder %s780_s28, %s520_s26  ;;  %s525_s20 = sshll.u32 %s626_s16, 4  ;;  %s526_s20 = int_to_ptr.vmem [resolvable:$false] %s525_s20 }
  0x41   : > { %s527_s27 = scalar_lea.vmem %s526_s20, 512  ;;  %p528_p8 = scmp.lt.s32.totalorder %s780_s28, %s526_s20 }
  0x42   : > { %p523_p1 = pnand %p521_p11, %p477_p3  ;;  %p529_p2 = scmp.lt.s32.totalorder %s527_s27, %s520_s26 }
  0x44   : > { %p524_p6 = pneg %p523_p1  ;;  %p530_p5 = por %p529_p2, %p528_p8 }
  0x46   : > { %p531_p4 = pnand %p530_p5, %p524_p6 }
  0x48   : > { %534 = shalt.err (!%p531_p4)
}
  0x49   : > { %415 = dma.hbm_to_vmem [thread:$0]  (!%p728_p0), %s770_s18, 256, %s780_s28, %s156_s30, %s624_s7, %s624_s7, %s625_s8  }
  0x4a   : > { %179 = sbr.rel (%p774_p12) target bundleno = 111 (0x6f), region = 28  ;;  %s814_s4 = sand.u32 (!%p774_p12), 1, %s605_s10  }
  0x4b   : > { %s388_s6 = sshll.u32 (!%p774_p12), %s814_s4, 4  ;;  %s182_s29 = scalar_lea.sflag (!%p774_p12), [#allocation3], %s814_s4 }
  0x4c   : > { %s185_s5 = scalar_lea.vmem (!%p774_p12), [#allocation2], %s388_s6  ;;  %p895_p8 = scmp.ne.s32.totalorder (!%p774_p12), %s889_s21, 0 }
  0x51   : > { %588 = dma.done.wait (%p895_p8), %s182_s29, 256  }
  0x52   : > { %590 = vsyncadd (%p895_p8), %s182_s29, 4294967040  ;;  %s191_s25 = scalar_lea.sflag [#allocation6], %s814_s4  ;;  %s194_s7 = scalar_lea.vmem [#allocation5], %s388_s6 }
  0x53   : > { %592 = dma.done.wait (%p895_p8), %s191_s25, 256  }
  0x54   : > { %594 = vsyncadd (%p895_p8), %s191_s25, 4294967040  ;;  %s401_s8 = smul.u32 24, %s814_s4  ;;  %v231_v0 = vld [vmem:[%s185_s5] sm:$0xff]  ;;  %v232_v1 = vld [vmem:[%s185_s5 + $0x8] sm:$0xff]  ;;  %v627_v7 = vmov 0.0   ;;  %s258_s15 = scalar_lea.sflag [#allocation4], %s814_s4 }
  0x55   : > { %v239_v2 = vld [vmem:[%s194_s7] sm:$0xff]  ;;  %vm233_vm0 = vcmp.gt.f32.partialorder %v231_v0, 0.0  ;;  %vm234_vm1 = vcmp.gt.f32.partialorder %v232_v1, 0.0  ;;  %v240_v3 = vld [vmem:[%s194_s7 + $0x8] sm:$0xff]  ;;  %s402_s18 = smul.u32 384, %s613_s12  ;;  %p896_p3 = scmp.ne.s32.totalorder %s890_s22, 0 }
  0x56   : > { %v241_v4 = vsel %vm233_vm0, %v239_v2, 0.0  ;;  %v242_v5 = vsel %vm234_vm1, %v240_v3, 0.0  ;;  %v249_v6 = vadd.f32 %v240_v3, %v239_v2  ;;  %v390_v8 = vsel %vm233_vm0, 1.0, %v627_v7  ;;  %s219_s21 = scalar_lea.vmem [#allocation7], %s401_s8  ;;  %s628_s26 = smov [#allocation7]  }
  0x57   : > { %v244_v9 = vadd.f32 %v242_v5, %v241_v4  ;;  %v391_v10 = vsel %vm234_vm1, 1.0, %v627_v7  ;;  %s271_s19 = sshll.u32 %s219_s21, 4  ;;  %s832_s3 = scalar_lea.hbm %s885_s2, %s402_s18  ;;  %s834_s19 = int_to_ptr.vmem [resolvable:$true] %s271_s19 }
  0x58   : > { %v254_v11 = vadd.f32 %v391_v10, %v390_v8  ;;  %393 = vst [vmem:[%s219_s21 + $0x8] sm:$0xff] %v249_v6  ;;  %s535_s12 = scalar_lea.vmem %s834_s19, 384  ;;  %s539_s16 = sshll.u32 %s628_s26, 4  ;;  %s540_s16 = int_to_ptr.vmem [resolvable:$false] %s539_s16 }
  0x59   : > { %246 = vst [vmem:[%s219_s21] sm:$0xff] %v244_v9  ;;  %p536_p0 = scmp.ne.s32.totalorder %s834_s19, %s535_s12  ;;  %s541_s20 = scalar_lea.vmem %s540_s16, 768 }
  0x5a   : > { %395 = vst [vmem:[%s219_s21 + $0x10] sm:$0xff] %v254_v11  ;;  %p542_p7 = scmp.lt.s32.totalorder %s834_s19, %s540_s16  ;;  %p543_p10 = scmp.lt.s32.totalorder %s541_s20, %s535_s12 }
  0x5b   : > { %p537_p12 = pnand %p536_p0, %p896_p3 }
  0x5c   : > { %p544_p9 = por %p543_p10, %p542_p7 }
  0x5d   : > { %p538_p13 = pneg %p537_p12 }
  0x5f   : > { %p545_p11 = pnand %p544_p9, %p538_p13 }
  0x61   : > { %548 = shalt.err (!%p545_p11)
}
  0x62   : > { %s549_s27 = scalar_lea.hbm %s832_s3, 384  ;;  %s553_s5 = scalar_lea.hbm %s885_s2, 768 }
  0x63   : > { %p550_p1 = scmp.ne.s32.totalorder %s832_s3, %s549_s27  ;;  %p554_p5 = scmp.lt.u32.totalorder %s832_s3, %s885_s2 }
  0x64   : > { %p555_p4 = scmp.lt.u32.totalorder %s553_s5, %s549_s27  ;;  %p557_p0 = scmp.lt.u32.totalorder %s549_s27, %s832_s3 }
  0x65   : > { %p551_p6 = pnand %p550_p1, %p896_p3 }
  0x66   : > { %p556_p8 = por %p555_p4, %p554_p5 }
  0x67   : > { %p552_p2 = pneg %p551_p6 }
  0x68   : > { %p558_p12 = por %p557_p0, %p556_p8 }
  0x6a   : > { %p559_p13 = pnand %p558_p12, %p552_p2 }
  0x6c   : > { %562 = shalt.err (!%p559_p13)
}
  0x6d   : > { %s629_s8 = smov 128   ;;  %s630_s18 = smov 8  }
  0x6e   : > { %407 = dma.vmem_to_hbm [thread:$0]  (%p896_p3), %s834_s19, 384, %s832_s3, %s258_s15, %s629_s8, %s629_s8, %s630_s18  }
  0x6f PF: > { %s286_s21 = sand.u32 1, %s601_s9   ;;  %p897_p7 = scmp.ne.s32.totalorder %s891_s24, 0 }
  0x70   : > { %p898_p10 = scmp.ge.s32.totalorder %s621_s14, 2  ;;  %s287_s28 = scalar_lea.sflag [#allocation4], %s286_s21 }
  0x72   : > { %p417_p9 = pnand %p898_p10, %p897_p7 }
  0x74   : > { %596 = dma.done.wait (!%p417_p9), %s287_s28, 384  }
  0x75   : > { %598 = vsyncadd (!%p417_p9), %s287_s28, 4294966912  ;;  %s21_s14 = sadd.s32 1, %s621_s14   ;;  %s899_s9 = smov %s605_s10 }
  0x76   : > { %p18_p11 = scmp.ge.s32.totalorder %s21_s14, 4   ;;  %s900_s10 = smov %s609_s11 }
  0x77   : > { %s901_s11 = smov %s702_s23  ;;  %s902_s12 = smov %s617_s13 }
  0x78   : > { %s903_s13 = smov %s905_s17  ;;  %20 = sbr.rel (!%p18_p11) target bundleno = 8 (0x8), region = 92 }
  0x7f   :  { %292 = vsyncpa [#allocation3], 1 }
  0x80   :  { %294 = vsyncpa [#allocation3 + $0x1], 1 }
  0x81   :  { %295 = vsyncpa [#allocation6], 1 }
  0x82   :  { %297 = vsyncpa [#allocation6 + $0x1], 1 }
  0x83   :  { %298 = vsyncpa [#allocation4], 1 }
  0x84   :  { %300 = vsyncpa [#allocation4 + $0x1], 1 }

</bundles_post_ra>
